<compile_context>
chip_gen: v6e
topology: v6e:2x2x1
jax: 0.10.0
libtpu: 0.0.40
codegen_flags: <defaults>
</compile_context>

<pallas_src>
import functools

import jax
import jax.numpy as jnp
from jax.experimental import pallas as pl
from jax.experimental.pallas import tpu as pltpu


def _decomp_kernel(a_ref, x_ref, res_ref, mean_ref, *, tb, inv_k):
    """One (batch-tile, channel-tile) block.

    a_ref:    (L, L)       banded integer tap counts (bf16 or f32)
    x_ref:    (TB, L, TC)  input series block
    res_ref:  (TB, L, TC)  x - moving_mean
    mean_ref: (TB, L, TC)  moving_mean
    """
    # Cast + scale the (small) averaging matrix once per grid step (VPU).
    a = a_ref[...].astype(jnp.float32) * inv_k                 # (L, L)
    for b in range(tb):                                        # static unroll, TB small
        xb = x_ref[b]                                          # (L, TC), native dtype
        mean = jnp.dot(a, xb,
                       preferred_element_type=jnp.float32,
                       precision=jax.lax.Precision.HIGHEST)    # exact f32 contract
        mean_ref[b] = mean.astype(mean_ref.dtype)
        res_ref[b] = (xb - mean).astype(res_ref.dtype)


def _build_tap_counts(seq_len, kernel_size):
    """(L, L) integer tap-count matrix folding replication padding + AvgPool1d.

    Entry [i, j] = number of taps of output row i's length-K window (per the
    module's asymmetric front/end replication) that land on input row j after
    clamping to [0, L-1].  moving_mean = (counts @ x) / K reproduces the
    PyTorch forward.
    """
    k = kernel_size
    front_rep = (k - 1) - (k - 1) // 2
    end_rep = (k - 1) // 2
    i = jnp.arange(seq_len, dtype=jnp.int32)[:, None]   # output row
    j = jnp.arange(seq_len, dtype=jnp.int32)[None, :]   # input column
    lo = i - front_rep                                  # first (unclamped) tap
    hi = i + end_rep                                    # last  (unclamped) tap
    # Pre-image of column j under clamping: j==0 absorbs all taps <= 0,
    # j==L-1 absorbs all taps >= L-1, interior columns are just {j}.
    lb = jnp.where(j == 0, lo, j)
    ub = jnp.where(j == seq_len - 1, hi, j)
    cnt = jnp.clip(jnp.minimum(hi, ub) - jnp.maximum(lo, lb) + 1, 0)
    # bf16 represents integers exactly up to 256; counts are <= K.
    dtype = jnp.bfloat16 if kernel_size <= 256 else jnp.float32
    return cnt.astype(dtype)


def _vmem_limit_bytes():
    """~75% of on-chip VMEM, generation-aware (v5e/v6e 128 MiB, v7x 64 MiB)."""
    try:
        cap = int(pltpu.get_tpu_info().vmem_capacity_bytes)
    except Exception:  # fall back to the most conservative generation (v7x)
        cap = 64 * 1024 * 1024
    return max(32 * 1024 * 1024, min((cap * 3) // 4, 128 * 1024 * 1024))


def _pick_tiles(B, L, C, itemsize, a_itemsize, vmem_limit):
    """Pick (TB, TC) so each grid step moves >= ~2 MB of HBM traffic and fits VMEM."""
    # Channel tile: lane-dense and as large as C allows (review: prefer 512).
    tc = C
    for cand in (512, 256, 128):
        if C % cand == 0:
            tc = cand
            break

    def step_vmem(tb_):
        blocks = 2 * 3 * tb_ * L * tc * itemsize   # x/res/mean, double-buffered
        a_bufs = 2 * L * L * a_itemsize            # A double-buffer reservation
        temps = L * L * 4 + L * tc * 4             # f32 A copy + f32 matmul result
        return blocks + a_bufs + temps

    budget = int(vmem_limit * 0.8)
    target = 2 * 1024 * 1024                       # >= ~2 MB HBM traffic per step
    tb = 1
    for d in range(1, B + 1):
        if B % d != 0:
            continue
        if step_vmem(d) > budget:
            break                                  # larger divisors only grow
        tb = d
        if 3 * d * L * tc * itemsize >= target:
            break
    return tb, tc


def series_decomp(x, kernel_size):
    """JAX/Pallas equivalent of the PyTorch series_decomp.forward.

    Args:
      x: (B, L, C) array (batch, seq_len, channels).
      kernel_size: moving-average window (static Python int, >= 1).
    Returns:
      (res, moving_mean), both (B, L, C), same dtype as x.
    """
    B, L, C = x.shape
    a = _build_tap_counts(L, kernel_size)          # (L, L), bf16 integer counts
    itemsize = jnp.dtype(x.dtype).itemsize
    a_itemsize = jnp.dtype(a.dtype).itemsize
    vmem_limit = _vmem_limit_bytes()
    # TODO(synk): for very long sequences (dense A no longer fits VMEM, roughly
    # L >~ 2k on v5e/v6e and ~1.5k on v7x) tile L with a (TL, TL+K-1) banded A
    # slab plus a K-1 halo on the x block instead of the dense (L, L) matrix.
    tb, tc = _pick_tiles(B, L, C, itemsize, a_itemsize, vmem_limit)

    kernel = functools.partial(_decomp_kernel, tb=tb,
                               inv_k=1.0 / float(kernel_size))
    grid = (B // tb, C // tc)

    res, mean = pl.pallas_call(
        kernel,
        out_shape=(
            jax.ShapeDtypeStruct((B, L, C), x.dtype),
            jax.ShapeDtypeStruct((B, L, C), x.dtype),
        ),
        grid=grid,
        in_specs=[
            # Constant index_map -> DMA'd once per core, VMEM-resident after.
            pl.BlockSpec((L, L), lambda i, j: (0, 0)),
            pl.BlockSpec((tb, L, tc), lambda i, j: (i, 0, j)),
        ],
        out_specs=(
            pl.BlockSpec((tb, L, tc), lambda i, j: (i, 0, j)),
            pl.BlockSpec((tb, L, tc), lambda i, j: (i, 0, j)),
        ),
        compiler_params=pltpu.CompilerParams(
            dimension_semantics=("parallel", "parallel"),
            vmem_limit_bytes=vmem_limit),
    )(a, x)
    return res, mean


def _reference(x, kernel_size):
    """Pure-JAX reference mirroring the PyTorch module exactly."""
    B, L, C = x.shape
    front_rep = kernel_size - 1 - (kernel_size - 1) // 2
    end_rep = (kernel_size - 1) // 2
    front = jnp.repeat(x[:, 0:1, :], front_rep, axis=1)
    end = jnp.repeat(x[:, L - 1:L, :], end_rep, axis=1)
    xpad = jnp.concatenate([front, x, end], axis=1)
    windows = jnp.stack([xpad[:, k:k + L, :] for k in range(kernel_size)],
                        axis=0)
    mean = jnp.mean(windows, axis=0)
    return x - mean, mean


if __name__ == "__main__":
    # Small shapes consistent with the module: (batch, seq_len, channels).
    B, L, C = 2, 16, 8
    kernel_size = 4  # even K exercises the asymmetric replication padding
    key = jax.random.PRNGKey(0)
    x = jax.random.normal(key, (B, L, C), dtype=jnp.float32)

    res, mean = series_decomp(x, kernel_size)
    jax.block_until_ready((res, mean))
    res_ref, mean_ref = _reference(x, kernel_size)
    assert jnp.allclose(res, res_ref, atol=1e-5, rtol=1e-4)
    assert jnp.allclose(mean, mean_ref, atol=1e-5, rtol=1e-4)

    # Production-like lane-dense case (d_model multiple of 128, FEDformer
    # kernel_size=25) to exercise the batch+channel-tiled grid path.
    B2, L2, C2, K2 = 2, 96, 512, 25
    x2 = jax.random.normal(jax.random.PRNGKey(1), (B2, L2, C2), jnp.float32)
    res2, mean2 = series_decomp(x2, K2)
    jax.block_until_ready((res2, mean2))
    res2_ref, mean2_ref = _reference(x2, K2)
    assert jnp.allclose(res2, res2_ref, atol=1e-5, rtol=1e-4)
    assert jnp.allclose(mean2, mean2_ref, atol=1e-5, rtol=1e-4)

    print("KERNEL_OK")
</pallas_src>

<mosaic_0001>
module attributes {stable_mosaic.version = 11 : i64} {
  func.func @_decomp_kernel(%arg0: i32, %arg1: i32, %arg2: memref<16x16xbf16, #tpu.memory_space<vmem>>, %arg3: memref<2x16x8xf32, #tpu.memory_space<vmem>>, %arg4: memref<2x16x8xf32, #tpu.memory_space<vmem>>, %arg5: memref<2x16x8xf32, #tpu.memory_space<vmem>>) attributes {dimension_semantics = [#tpu.dimension_semantics<parallel>, #tpu.dimension_semantics<parallel>], iteration_bounds = array<i64: 1, 1>, scalar_prefetch = 0 : i64, scratch_operands = 0 : i64, tpu.core_type = #tpu.core_type<tc>, window_params = [{pipeline_mode = #tpu.pipeline_mode<synchronous>, transform_indices = @transform_0, window_bounds = array<i64: 16, 16>}, {transform_indices = @transform_1, window_bounds = array<i64: 2, 16, 8>}, {transform_indices = @transform_2, window_bounds = array<i64: 2, 16, 8>}, {transform_indices = @transform_3, window_bounds = array<i64: 2, 16, 8>}]} {
    %c0 = arith.constant 0 : index
    %c0_0 = arith.constant 0 : index
    %0 = vector.load %arg2[%c0, %c0_0] : memref<16x16xbf16, #tpu.memory_space<vmem>>, vector<16x16xbf16>
    %1 = arith.extf %0 : vector<16x16xbf16> to vector<16x16xf32>
    %cst = arith.constant 2.500000e-01 : f32
    %2 = vector.broadcast %cst : f32 to vector<16x16xf32>
    %3 = arith.mulf %1, %2 : vector<16x16xf32>
    %c0_1 = arith.constant 0 : index
    %c0_2 = arith.constant 0 : index
    %c0_3 = arith.constant 0 : index
    %4 = vector.load %arg3[%c0_1, %c0_2, %c0_3] : memref<2x16x8xf32, #tpu.memory_space<vmem>>, vector<1x16x8xf32>
    %5 = vector.shape_cast %4 : vector<1x16x8xf32> to vector<16x8xf32>
    %cst_4 = arith.constant dense<0.000000e+00> : vector<16x8xf32>
    %6 = tpu.matmul %3, %5, %cst_4 {dimension_numbers = #tpu.dot_dimension_numbers<[1], [0], [0], [1], [0, 0, 1, 1], [], []>, precision = #tpu.contract_precision<fp32>} : vector<16x16xf32>, vector<16x8xf32>, vector<16x8xf32> -> vector<16x8xf32>
    %c0_5 = arith.constant 0 : index
    %c0_6 = arith.constant 0 : index
    %c0_7 = arith.constant 0 : index
    %7 = vector.load %arg5[%c0_5, %c0_6, %c0_7] : memref<2x16x8xf32, #tpu.memory_space<vmem>>, vector<1x16x8xf32>
    %8 = vector.shape_cast %7 : vector<1x16x8xf32> to vector<16x8xf32>
    %9 = vector.shape_cast %6 : vector<16x8xf32> to vector<1x16x8xf32>
    tpu.vector_store %arg5[%c0_5, %c0_6, %c0_7], %9 {strides = array<i32>} : memref<2x16x8xf32, #tpu.memory_space<vmem>>, vector<1x16x8xf32>,
    %10 = arith.subf %5, %6 : vector<16x8xf32>
    %c0_8 = arith.constant 0 : index
    %c0_9 = arith.constant 0 : index
    %c0_10 = arith.constant 0 : index
    %11 = vector.load %arg4[%c0_8, %c0_9, %c0_10] : memref<2x16x8xf32, #tpu.memory_space<vmem>>, vector<1x16x8xf32>
    %12 = vector.shape_cast %11 : vector<1x16x8xf32> to vector<16x8xf32>
    %13 = vector.shape_cast %10 : vector<16x8xf32> to vector<1x16x8xf32>
    tpu.vector_store %arg4[%c0_8, %c0_9, %c0_10], %13 {strides = array<i32>} : memref<2x16x8xf32, #tpu.memory_space<vmem>>, vector<1x16x8xf32>,
    %c1 = arith.constant 1 : index
    %c0_11 = arith.constant 0 : index
    %c0_12 = arith.constant 0 : index
    %14 = vector.load %arg3[%c1, %c0_11, %c0_12] : memref<2x16x8xf32, #tpu.memory_space<vmem>>, vector<1x16x8xf32>
    %15 = vector.shape_cast %14 : vector<1x16x8xf32> to vector<16x8xf32>
    %cst_13 = arith.constant dense<0.000000e+00> : vector<16x8xf32>
    %16 = tpu.matmul %3, %15, %cst_13 {dimension_numbers = #tpu.dot_dimension_numbers<[1], [0], [0], [1], [0, 0, 1, 1], [], []>, precision = #tpu.contract_precision<fp32>} : vector<16x16xf32>, vector<16x8xf32>, vector<16x8xf32> -> vector<16x8xf32>
    %c1_14 = arith.constant 1 : index
    %c0_15 = arith.constant 0 : index
    %c0_16 = arith.constant 0 : index
    %17 = vector.load %arg5[%c1_14, %c0_15, %c0_16] : memref<2x16x8xf32, #tpu.memory_space<vmem>>, vector<1x16x8xf32>
    %18 = vector.shape_cast %17 : vector<1x16x8xf32> to vector<16x8xf32>
    %19 = vector.shape_cast %16 : vector<16x8xf32> to vector<1x16x8xf32>
    tpu.vector_store %arg5[%c1_14, %c0_15, %c0_16], %19 {strides = array<i32>} : memref<2x16x8xf32, #tpu.memory_space<vmem>>, vector<1x16x8xf32>,
    %20 = arith.subf %15, %16 : vector<16x8xf32>
    %c1_17 = arith.constant 1 : index
    %c0_18 = arith.constant 0 : index
    %c0_19 = arith.constant 0 : index
    %21 = vector.load %arg4[%c1_17, %c0_18, %c0_19] : memref<2x16x8xf32, #tpu.memory_space<vmem>>, vector<1x16x8xf32>
    %22 = vector.shape_cast %21 : vector<1x16x8xf32> to vector<16x8xf32>
    %23 = vector.shape_cast %20 : vector<16x8xf32> to vector<1x16x8xf32>
    tpu.vector_store %arg4[%c1_17, %c0_18, %c0_19], %23 {strides = array<i32>} : memref<2x16x8xf32, #tpu.memory_space<vmem>>, vector<1x16x8xf32>,
    return
  }
  func.func @transform_0(%arg0: i32, %arg1: i32) -> (i32, i32) {
    %c0_i32 = arith.constant 0 : i32
    %c0_i32_0 = arith.constant 0 : i32
    %c0_i32_1 = arith.constant 0 : i32
    return %c0_i32, %c0_i32_0 : i32, i32
  }
  func.func @transform_1(%arg0: i32, %arg1: i32) -> (i32, i32, i32) {
    %c0_i32 = arith.constant 0 : i32
    %c0_i32_0 = arith.constant 0 : i32
    return %arg0, %c0_i32, %arg1 : i32, i32, i32
  }
  func.func @transform_2(%arg0: i32, %arg1: i32) -> (i32, i32, i32) {
    %c0_i32 = arith.constant 0 : i32
    %c0_i32_0 = arith.constant 0 : i32
    return %arg0, %c0_i32, %arg1 : i32, i32, i32
  }
  func.func @transform_3(%arg0: i32, %arg1: i32) -> (i32, i32, i32) {
    %c0_i32 = arith.constant 0 : i32
    %c0_i32_0 = arith.constant 0 : i32
    return %arg0, %c0_i32, %arg1 : i32, i32, i32
  }
}

</mosaic_0001>

<bundles_post_ra>
// kernel: tpu_custom_call.1
= control target key start
LH: loop header
LB: loop body
LE: loop exit
PB: predicated region body
PF: predicated region fallthrough
CT: control target
= control target key end

     0   :  { %vm21_vm0 = vcmask 130048   ;;  %vm530_vm1 = vcmask 64512   ;;  %s1363_s1 = inlined_call_operand.vmem [shape: f32[2,16,8], index: 1, kind: input, shape index: {}]   ;;  %s1364_s0 = inlined_call_operand.vmem [shape: bf16[16,16], index: 0, kind: input, shape index: {}]   ;;  %s1365_s3 = inlined_call_operand.vmem [shape: f32[2,16,8], index: 3, kind: output, shape index: {1}]   ;;  %s1366_s2 = inlined_call_operand.vmem [shape: f32[2,16,8], index: 2, kind: output, shape index: {0}]  }
   0x1   :  { %v1223_v0 = vld [vmem:[%s1363_s1 + $0x8] sm:$0xff]  ;;  %v1228_v1 = vld [vmem:[%s1363_s1] sm:$0xff]  ;;  %v1254_v17 = vld [vmem:[%s1363_s1 + $0x18] sm:$0xff] }
   0x2   :  { %v1065_v2 = vld [vmem:[%s1364_s0] sm:$0xff]   ;;  %v1234_v3 = vand.u32 4294901760, %v1223_v0  ;;  %v1237_v4 = vand.u32 4294901760, %v1228_v1  ;;  %v1266_v22 = vld [vmem:[%s1363_s1 + $0x10] sm:$0xff]  ;;  %v1269_v25 = vand.u32 4294901760, %v1254_v17 }
   0x3   :  { %v1066_v5 = vunpack.c.l.bf16 %v1065_v2  ;;  %v1067_v6 = vunpack.c.h.bf16 %v1065_v2  ;;  %v1278_v28 = vand.u32 4294901760, %v1266_v22 }
   0x4   :  { %1116 = vmatprep.subr.mxu0 %v1234_v3  ;;  %v145_v7 = vsub.f32 %v1223_v0, %v1234_v3  ;;  %v152_v8 = vsub.f32 %v1228_v1, %v1237_v4  ;;  %v657_v31 = vsub.f32 %v1254_v17, %v1269_v25 }
   0x5   :  { %v17_v9 = vmul.f32 0.25, %v1066_v5  ;;  %v18_v10 = vmul.f32 0.25, %v1067_v6  ;;  %1117 = vmatpush3.msra.mxu0 %v1234_v3  ;;  %v664_v34 = vsub.f32 %v1266_v22, %v1278_v28 }
   0x6   :  { %v146_v11 = vand.u32 4294901760, %v145_v7  ;;  %1118 = vmatprep.subr.mxu0 %v1237_v4  ;;  %v153_v12 = vand.u32 4294901760, %v152_v8  ;;  %v658_v35 = vand.u32 4294901760, %v657_v31 }
   0x7   :  { %v23_v13 = vsel %vm21_vm0, %v17_v9, 0  ;;  %v26_v14 = vsel %vm21_vm0, %v18_v10, 0  ;;  %1119 = vmatpush3.msra.mxu0 %v1237_v4  ;;  %v665_v36 = vand.u32 4294901760, %v664_v34 }
   0x8   :  { %v1247_v15 = vand.u32 4294901760, %v23_v13  ;;  %v1249_v16 = vand.u32 4294901760, %v26_v14  ;;  %v147_v18 = vsub.f32 %v145_v7, %v146_v11  ;;  %v154_v19 = vsub.f32 %v152_v8, %v153_v12  ;;  %1130 = vmatprep.subr.mxu0 %v145_v7 }
   0x9   :  { %v659_v37 = vsub.f32 %v657_v31, %v658_v35  ;;  %v666_v38 = vsub.f32 %v664_v34, %v665_v36 }
   0xa   :  { %v1257_v20 = vsub.f32 %v23_v13, %v1247_v15  ;;  %1127 = vmatprep.mubr.f32.mxu1 %v1247_v15  ;;  %v1261_v21 = vsub.f32 %v26_v14, %v1249_v16  ;;  %v148_v23 = vand.u32 4294901760, %v147_v18  ;;  %v155_v24 = vand.u32 4294901760, %v154_v19 }
   0xb   :  { %v660_v39 = vand.u32 4294901760, %v659_v37  ;;  %v667_v40 = vand.u32 4294901760, %v666_v38 }
   0xc   :  { %v1272_v26 = vand.u32 4294901760, %v1257_v20  ;;  %v1275_v27 = vand.u32 4294901760, %v1261_v21  ;;  %1123 = vmatprep.subr.mxu1 %v148_v23 }
   0xd   :  { %1124 = vmatpush3.msra.mxu1 %v148_v23 }
   0xe   :  { %v98_v29 = vsub.f32 %v1257_v20, %v1272_v26  ;;  %v108_v30 = vsub.f32 %v1261_v21, %v1275_v27  ;;  %1125 = vmatprep.subr.mxu1 %v155_v24 }
   0xf   :  { %1126 = vmatpush3.msra.mxu1 %v155_v24 }
  0x10   :  { %v99_v32 = vand.u32 4294901760, %v98_v29  ;;  %v109_v33 = vand.u32 4294901760, %v108_v30  ;;  %1128 = vmatmul.mubr.f32.vlgmr.msra.gmra.mxu1 %v1249_v16  ;;  %1137 = vmatprep.subr.mxu1 %v1234_v3 }
  0x11   :  { %1138 = vmatpush3.msra.mxu1 %v1234_v3  ;;  %1141 = vmatprep.mubr.f32.mxu1 %v1272_v26 }
  0x12   :  { %1120 = vmatprep.mubr.f32.mxu0 %v99_v32  ;;  %1139 = vmatprep.subr.mxu1 %v1237_v4 }
  0x13   :  { %1121 = vmatmul.mubr.f32.vlgmr.msra.gmra.mxu0 %v109_v33  ;;  %1140 = vmatpush3.msra.mxu1 %v1237_v4 }
  0x14   :  { %1131 = vmatpush3.msra.mxu0 %v145_v7  ;;  %1134 = vmatprep.mubr.f32.mxu0 %v1257_v20 }
  0x15   :  { %1132 = vmatprep.subr.mxu0 %v152_v8  ;;  %1142 = vmatmul.mubr.f32.vlgmr.msra.gmra.mxu1 %v1275_v27 }
  0x16   :  { %1133 = vmatpush3.msra.mxu0 %v152_v8  ;;  %1151 = vmatprep.subr.mxu1 %v1234_v3 }
  0x17   :  { %1144 = vmatprep.subr.mxu0 %v146_v11  ;;  %1135 = vmatmul.mubr.f32.vlgmr.msra.gmra.mxu0 %v1261_v21 }
  0x18   :  { %1145 = vmatpush3.msra.mxu0 %v146_v11  ;;  %1152 = vmatpush3.msra.mxu1 %v1234_v3 }
  0x19   :  { %1146 = vmatprep.subr.mxu0 %v153_v12  ;;  %1153 = vmatprep.subr.mxu1 %v1237_v4 }
  0x1a   :  { %1147 = vmatpush3.msra.mxu0 %v153_v12  ;;  %1148 = vmatprep.mubr.f32.mxu0 %v1247_v15 }
  0x1b   :  { %1154 = vmatpush3.msra.mxu1 %v1237_v4  ;;  %1155 = vmatprep.mubr.f32.mxu1 %v1247_v15 }
  0x1c   :  { %1158 = vmatprep.subr.mxu0 %v1269_v25  ;;  %1149 = vmatmul.mubr.f32.vlgmr.msra.gmra.mxu0 %v1249_v16 }
  0x1d   :  { %1156 = vmatmul.mubr.f32.vlgmr.msra.gmra.mxu1 %v1249_v16  ;;  %1159 = vmatpush3.msra.mxu0 %v1269_v25 }
  0x1e   :  { %1165 = vmatprep.subr.mxu1 %v660_v39  ;;  %1160 = vmatprep.subr.mxu0 %v1278_v28 }
  0x1f   :  { %1166 = vmatpush3.msra.mxu1 %v660_v39  ;;  %1161 = vmatpush3.msra.mxu0 %v1278_v28 }
  0x20   :  { %1167 = vmatprep.subr.mxu1 %v667_v40  ;;  %1162 = vmatprep.mubr.f32.mxu0 %v99_v32 }
  0x21   :  { %1168 = vmatpush3.msra.mxu1 %v667_v40  ;;  %1169 = vmatprep.mubr.f32.mxu1 %v1247_v15 }
  0x22   :  { %1172 = vmatprep.subr.mxu0 %v657_v31  ;;  %1163 = vmatmul.mubr.f32.vlgmr.msra.gmra.mxu0 %v109_v33 }
  0x23   :  { %1170 = vmatmul.mubr.f32.vlgmr.msra.gmra.mxu1 %v1249_v16  ;;  %1173 = vmatpush3.msra.mxu0 %v657_v31 }
  0x24   :  { %1179 = vmatprep.subr.mxu1 %v1269_v25  ;;  %1174 = vmatprep.subr.mxu0 %v664_v34 }
  0x25   :  { %1180 = vmatpush3.msra.mxu1 %v1269_v25  ;;  %1175 = vmatpush3.msra.mxu0 %v664_v34 }
  0x26   :  { %1181 = vmatprep.subr.mxu1 %v1278_v28  ;;  %1176 = vmatprep.mubr.f32.mxu0 %v1257_v20 }
  0x27   :  { %1182 = vmatpush3.msra.mxu1 %v1278_v28  ;;  %1183 = vmatprep.mubr.f32.mxu1 %v1272_v26 }
  0x28   :  { %1186 = vmatprep.subr.mxu0 %v658_v35  ;;  %1177 = vmatmul.mubr.f32.vlgmr.msra.gmra.mxu0 %v1261_v21 }
  0x29   :  { %1184 = vmatmul.mubr.f32.vlgmr.msra.gmra.mxu1 %v1275_v27  ;;  %1187 = vmatpush3.msra.mxu0 %v658_v35 }
  0x2a   :  { %1193 = vmatprep.subr.mxu1 %v1269_v25  ;;  %1188 = vmatprep.subr.mxu0 %v665_v36 }
  0x2b   :  { %1194 = vmatpush3.msra.mxu1 %v1269_v25  ;;  %1189 = vmatpush3.msra.mxu0 %v665_v36 }
  0x2c   :  { %1195 = vmatprep.subr.mxu1 %v1278_v28  ;;  %1190 = vmatprep.mubr.f32.mxu0 %v1247_v15 }
  0x2d   :  { %1196 = vmatpush3.msra.mxu1 %v1278_v28  ;;  %1197 = vmatprep.mubr.f32.mxu1 %v1247_v15 }
  0x2e   :  { %1191 = vmatmul.mubr.f32.vlgmr.msra.gmra.mxu0 %v1249_v16  ;;  %1198 = vmatmul.mubr.f32.vlgmr.msra.gmra.mxu1 %v1249_v16 }
  0xd0   :  { %v1129_v41 = vpop.f32.mrf.mxu1 }
  0xd2   :  { %v192_v43 = vpop.f32.mrf.mxu1 }
  0xd3   :  { %v1122_v42 = vpop.f32.mrf.mxu0 }
  0xd4   :  { %v199_v45 = vadd.f32 %v1129_v41, %v1122_v42 }
  0xd5   :  { %v101_v44 = vpop.f32.mrf.mxu0  ;;  %v1143_v49 = vpop.f32.mrf.mxu1 }
  0xd6   :  { %v193_v47 = vadd.f32 %v192_v43, %v101_v44 }
  0xd7   :  { %v1136_v46 = vpop.f32.mrf.mxu0  ;;  %v356_v53 = vpop.f32.mrf.mxu1 }
  0xd8   :  { %v282_v48 = vadd.f32 %v1136_v46, %v199_v45 }
  0xd9   :  { %v274_v50 = vpop.f32.mrf.mxu0 }
  0xda   :  { %v365_v51 = vadd.f32 %v1143_v49, %v282_v48  ;;  %v275_v52 = vadd.f32 %v274_v50, %v193_v47 }
  0xdc   :  { %v357_v54 = vadd.f32 %v356_v53, %v275_v52  ;;  %v1150_v55 = vpop.f32.mrf.mxu0 }
  0xdd   :  { %v448_v56 = vadd.f32 %v1150_v55, %v365_v51  ;;  %v1157_v57 = vpop.f32.mrf.mxu1 }
  0xde   :  { %v441_v58 = vpop.f32.mrf.mxu0 }
  0xdf   :  { %v527_v59 = vadd.f32 %v1157_v57, %v448_v56  ;;  %v442_v60 = vadd.f32 %v441_v58, %v357_v54  ;;  %v520_v61 = vpop.f32.mrf.mxu1 }
  0xe1   :  { %532 = vst.msk [vmem:[%s1365_s3 + $0x8] sm:$0xff] %vm530_vm1, %v527_v59  ;;  %v534_v62 = vsub.f32 %v1223_v0, %v527_v59  ;;  %v521_v63 = vadd.f32 %v520_v61, %v442_v60 }
  0xe2   :  { %v1164_v2 = vpop.f32.mrf.mxu0 }
  0xe3   :  { %536 = vst.msk [vmem:[%s1366_s2 + $0x8] sm:$0xff] %vm530_vm1, %v534_v62  ;;  %531 = vst.msk [vmem:[%s1365_s3] sm:$0xff] %vm530_vm1, %v521_v63  ;;  %v533_v3 = vsub.f32 %v1228_v1, %v521_v63  ;;  %v1171_v4 = vpop.f32.mrf.mxu1 }
  0xe4   :  { %v613_v5 = vpop.f32.mrf.mxu0  ;;  %v711_v6 = vadd.f32 %v1171_v4, %v1164_v2 }
  0xe5   :  { %535 = vst.msk [vmem:[%s1366_s2] sm:$0xff] %vm530_vm1, %v533_v3  ;;  %v704_v0 = vpop.f32.mrf.mxu1 }
  0xe6   :  { %v705_v8 = vadd.f32 %v704_v0, %v613_v5 }
  0xe8   :  { %v1178_v7 = vpop.f32.mrf.mxu0 }
  0xe9   :  { %v794_v9 = vadd.f32 %v1178_v7, %v711_v6  ;;  %v1185_v10 = vpop.f32.mrf.mxu1 }
  0xea   :  { %v786_v11 = vpop.f32.mrf.mxu0 }
  0xeb   :  { %v877_v12 = vadd.f32 %v1185_v10, %v794_v9  ;;  %v787_v13 = vadd.f32 %v786_v11, %v705_v8  ;;  %v868_v14 = vpop.f32.mrf.mxu1 }
  0xed   :  { %v869_v15 = vadd.f32 %v868_v14, %v787_v13 }
  0xee   :  { %v1192_v16 = vpop.f32.mrf.mxu0  ;;  %v1199_v1 = vpop.f32.mrf.mxu1 }
  0xef   :  { %v960_v18 = vadd.f32 %v1192_v16, %v877_v12 }
  0xf0   :  { %v953_v19 = vpop.f32.mrf.mxu0  ;;  %v1032_v23 = vpop.f32.mrf.mxu1 }
  0xf1   :  { %v1039_v20 = vadd.f32 %v1199_v1, %v960_v18  ;;  %v954_v21 = vadd.f32 %v953_v19, %v869_v15 }
  0xf3   :  { %1061 = vst.msk [vmem:[%s1365_s3 + $0x18] sm:$0xff] %vm530_vm1, %v1039_v20  ;;  %v1046_v24 = vsub.f32 %v1254_v17, %v1039_v20  ;;  %v1033_v25 = vadd.f32 %v1032_v23, %v954_v21 }
  0xf5   :  { %1063 = vst.msk [vmem:[%s1366_s2 + $0x18] sm:$0xff] %vm530_vm1, %v1046_v24  ;;  %1060 = vst.msk [vmem:[%s1365_s3 + $0x10] sm:$0xff] %vm530_vm1, %v1033_v25  ;;  %v1045_v26 = vsub.f32 %v1266_v22, %v1033_v25 }
  0xf7   :  { %1062 = vst.msk [vmem:[%s1366_s2 + $0x10] sm:$0xff] %vm530_vm1, %v1045_v26 }

</bundles_post_ra>
